<compile_context>
chip_gen: v7x
topology: tpu7x:2x2x1
jax: 0.10.0
libtpu: 0.0.40
codegen_flags: <defaults>
</compile_context>

<pallas_src>
import functools

import jax
import jax.numpy as jnp
from jax import lax
from jax.experimental import pallas as pl
from jax.experimental.pallas import tpu as pltpu


def _round_up(x, m):
    return (x + m - 1) // m * m


def cnn_kernel(emb_ref, wconv_ref, bconv_ref, wlin_ref, blin_ref, out_ref, *,
               seq_len, seg):
    """One batch tile (Bt elements) per grid step.

    emb_ref  : (Bt, seg, E)  zero-padded embedded sequences
                             (row 0 zero, rows 1..L tokens, rows L+1.. zero)
    wconv_ref: (3, E, C)     conv weight (tap, embed, out-channel)
    bconv_ref: (1, C)        conv bias
    wlin_ref : (C, NLP)      linear weight, labels lane-padded to NLP
    blin_ref : (1, NLP)      linear bias, padded labels get a huge negative
    out_ref  : (Bt, NLP)     softmax probabilities (padded labels -> 0)
    """
    Bt, _, E = emb_ref.shape
    C = wconv_ref.shape[2]
    L = seq_len
    N = Bt * seg

    # Fold batch into the matmul M dimension (tile-aligned reshape).
    x = emb_ref[...].reshape(N, E)

    # Conv2d(1, C, (3, E), padding=(1, 0)) == 3 full-height matmuls whose
    # (N, C) results are aligned with cheap XLU rolls (roll by N - t == -t).
    acc = jnp.dot(x, wconv_ref[0], preferred_element_type=jnp.float32)
    acc = acc + pltpu.roll(
        jnp.dot(x, wconv_ref[1], preferred_element_type=jnp.float32),
        shift=N - 1, axis=0)
    acc = acc + pltpu.roll(
        jnp.dot(x, wconv_ref[2], preferred_element_type=jnp.float32),
        shift=N - 2, axis=0)
    acc = acc + bconv_ref[...]                    # (N, C) + (1, C)

    # ReLU, then zero the rows that are not real conv outputs (local row >= L
    # of each length-`seg` segment; also covers the roll wrap-around rows).
    acc = jnp.maximum(acc, 0.0)
    row = lax.broadcasted_iota(jnp.int32, (N, C), 0)
    acc = jnp.where((row % seg) < L, acc, 0.0)

    # max_pool2d(kernel=(L, 1)): per-batch max over the sequence axis.
    pooled = jnp.max(acc.reshape(Bt, seg, C), axis=1)           # (Bt, C)

    # Linear + Softmax(dim=1). Padded label columns carry a huge negative bias
    # -> exp == 0 -> they do not perturb the softmax over the real labels.
    logits = jnp.dot(pooled, wlin_ref[...],
                     preferred_element_type=jnp.float32) + blin_ref[...]
    m = jnp.max(logits, axis=-1, keepdims=True)
    e = jnp.exp(logits - m)
    denom = jnp.sum(e, axis=-1, keepdims=True)
    out_ref[...] = e * pl.reciprocal(denom, approx=True)


def cnn_forward(x_ids, emb_table, w_conv, b_conv, w_lin, b_lin, *,
                batch_tile=128):
    B, L = x_ids.shape
    E = emb_table.shape[1]
    C = w_conv.shape[2]
    NL = w_lin.shape[1]

    # Sublane-align the padded sequence (>= L + 2, multiple of 8); lane-align
    # the label dimension so output stores are dense.
    seg = _round_up(L + 2, 8)
    NLP = _round_up(NL, 128)

    # Pick the batch tile from a small VMEM budget (double-buffered input
    # block), then keep the output block sublane-aligned.
    vmem_budget = 8 * 1024 * 1024
    max_bt = max(1, vmem_budget // (2 * seg * E * 4))
    Bt = min(batch_tile, max_bt, B)
    if Bt < B:
        Bt = max(8, (Bt // 8) * 8)
    Bp = _round_up(B, Bt)

    # Embedding gather (padding_idx=0 row of emb_table is zero) + conv height
    # padding (1 zero row in front, seg - L - 1 zero rows behind), batch padded
    # to a multiple of Bt.  TODO(synk): fuse into the kernel via manual DMA.
    emb = emb_table[x_ids]                                        # (B, L, E)
    emb_pad = jnp.zeros((Bp, seg, E), jnp.float32).at[:B, 1:L + 1, :].set(emb)

    # Lane-pad the classifier; padded labels get prob exactly 0.
    w_lin_p = jnp.zeros((C, NLP), jnp.float32).at[:, :NL].set(w_lin)
    b_lin_p = jnp.full((1, NLP), -1e30, jnp.float32).at[:, :NL].set(
        b_lin.reshape(1, NL))
    b_conv2 = b_conv.reshape(1, C)

    kernel = functools.partial(cnn_kernel, seq_len=L, seg=seg)
    out = pl.pallas_call(
        kernel,
        out_shape=jax.ShapeDtypeStruct((Bp, NLP), jnp.float32),
        grid=(Bp // Bt,),
        in_specs=[
            pl.BlockSpec((Bt, seg, E), lambda b: (b, 0, 0)),
            pl.BlockSpec((3, E, C), lambda b: (0, 0, 0)),
            pl.BlockSpec((1, C), lambda b: (0, 0)),
            pl.BlockSpec((C, NLP), lambda b: (0, 0)),
            pl.BlockSpec((1, NLP), lambda b: (0, 0)),
        ],
        out_specs=pl.BlockSpec((Bt, NLP), lambda b: (b, 0)),
        compiler_params=pltpu.CompilerParams(
            dimension_semantics=("parallel",)),
    )(emb_pad, w_conv, b_conv2, w_lin_p, b_lin_p)
    return out[:B, :NL]


def cnn_reference(x_ids, emb_table, w_conv, b_conv, w_lin, b_lin):
    """Pure-JAX reference of the same forward pass."""
    L = x_ids.shape[1]
    emb = emb_table[x_ids]
    emb_pad = jnp.pad(emb, ((0, 0), (1, 1), (0, 0)))
    conv = (jnp.einsum("ble,ec->blc", emb_pad[:, 0:L], w_conv[0])
            + jnp.einsum("ble,ec->blc", emb_pad[:, 1:L + 1], w_conv[1])
            + jnp.einsum("ble,ec->blc", emb_pad[:, 2:L + 2], w_conv[2])
            + b_conv)
    relu = jnp.maximum(conv, 0.0)
    pooled = jnp.max(relu, axis=1)
    logits = pooled @ w_lin + b_lin
    return jax.nn.softmax(logits, axis=-1)


if __name__ == "__main__":
    # Small shapes consistent with the module's forward pass.
    B, L = 16, 8           # batch, sequence length (token ids)
    vocab_size = 40        # stands in for len(word_id_dict) + 1
    E = 128                # embedding_dim (torch default 300; kept lane-aligned)
    C = 32                 # output_dim (conv out channels; torch default 50)
    NL = 4                 # label_num

    key = jax.random.PRNGKey(0)
    k_ids, k_emb, k_wc, k_bc, k_wl, k_bl = jax.random.split(key, 6)

    x_ids = jax.random.randint(k_ids, (B, L), 0, vocab_size, dtype=jnp.int32)

    # Embedding table; padding_idx=0 -> row 0 is zero.
    emb_table = 0.1 * jax.random.normal(k_emb, (vocab_size, E), dtype=jnp.float32)
    emb_table = emb_table.at[0].set(0.0)

    # Conv2d(1, C, (3, E)) weight: torch (C, 1, 3, E) -> stored as (3, E, C).
    w_conv = 0.1 * jax.random.normal(k_wc, (3, E, C), dtype=jnp.float32)
    b_conv = 0.1 * jax.random.normal(k_bc, (1, C), dtype=jnp.float32)

    # Linear(C, NL): torch weight (NL, C) -> stored transposed as (C, NL).
    w_lin = 0.1 * jax.random.normal(k_wl, (C, NL), dtype=jnp.float32)
    b_lin = 0.1 * jax.random.normal(k_bl, (1, NL), dtype=jnp.float32)

    # batch_tile=8 -> two grid steps of Bt=8 (exercises the batch tiling).
    y = cnn_forward(x_ids, emb_table, w_conv, b_conv, w_lin, b_lin, batch_tile=8)
    y = jax.block_until_ready(y)

    y_ref = cnn_reference(x_ids, emb_table, w_conv, b_conv, w_lin, b_lin)
    assert y.shape == (B, NL)
    assert jnp.allclose(jnp.sum(y, axis=-1), 1.0, atol=5e-3)      # approx recip
    assert jnp.allclose(y, y_ref, atol=2e-3, rtol=2e-3)

    print("KERNEL_OK")
</pallas_src>

<mosaic_0001>
module attributes {stable_mosaic.version = 11 : i64} {
  func.func @cnn_kernel(%arg0: i32, %arg1: memref<8x16x128xf32, #tpu.memory_space<vmem>>, %arg2: memref<3x128x32xf32, #tpu.memory_space<vmem>>, %arg3: memref<1x32xf32, #tpu.memory_space<vmem>>, %arg4: memref<32x128xf32, #tpu.memory_space<vmem>>, %arg5: memref<1x128xf32, #tpu.memory_space<vmem>>, %arg6: memref<8x128xf32, #tpu.memory_space<vmem>>) attributes {dimension_semantics = [#tpu.dimension_semantics<parallel>], iteration_bounds = array<i64: 2>, scalar_prefetch = 0 : i64, scratch_operands = 0 : i64, tpu.core_type = #tpu.core_type<tc>, window_params = [{transform_indices = @transform_0, window_bounds = array<i64: 8, 16, 128>}, {pipeline_mode = #tpu.pipeline_mode<synchronous>, transform_indices = @transform_1, window_bounds = array<i64: 3, 128, 32>}, {pipeline_mode = #tpu.pipeline_mode<synchronous>, transform_indices = @transform_2, window_bounds = array<i64: 1, 32>}, {pipeline_mode = #tpu.pipeline_mode<synchronous>, transform_indices = @transform_3, window_bounds = array<i64: 32, 128>}, {pipeline_mode = #tpu.pipeline_mode<synchronous>, transform_indices = @transform_4, window_bounds = array<i64: 1, 128>}, {transform_indices = @transform_5, window_bounds = array<i64: 8, 128>}]} {
    %c0 = arith.constant 0 : index
    %c0_0 = arith.constant 0 : index
    %c0_1 = arith.constant 0 : index
    %0 = vector.load %arg1[%c0, %c0_0, %c0_1] : memref<8x16x128xf32, #tpu.memory_space<vmem>>, vector<8x16x128xf32>
    %1 = vector.shape_cast %0 : vector<8x16x128xf32> to vector<128x128xf32>
    %c0_2 = arith.constant 0 : index
    %c0_3 = arith.constant 0 : index
    %c0_4 = arith.constant 0 : index
    %2 = vector.load %arg2[%c0_2, %c0_3, %c0_4] : memref<3x128x32xf32, #tpu.memory_space<vmem>>, vector<1x128x32xf32>
    %3 = vector.shape_cast %2 : vector<1x128x32xf32> to vector<128x32xf32>
    %cst = arith.constant dense<0.000000e+00> : vector<128x32xf32>
    %4 = tpu.matmul %1, %3, %cst {dimension_numbers = #tpu.dot_dimension_numbers<[1], [0], [0], [1], [0, 0, 1, 1], [], []>} : vector<128x128xf32>, vector<128x32xf32>, vector<128x32xf32> -> vector<128x32xf32>
    %c1 = arith.constant 1 : index
    %c0_5 = arith.constant 0 : index
    %c0_6 = arith.constant 0 : index
    %5 = vector.load %arg2[%c1, %c0_5, %c0_6] : memref<3x128x32xf32, #tpu.memory_space<vmem>>, vector<1x128x32xf32>
    %6 = vector.shape_cast %5 : vector<1x128x32xf32> to vector<128x32xf32>
    %cst_7 = arith.constant dense<0.000000e+00> : vector<128x32xf32>
    %7 = tpu.matmul %1, %6, %cst_7 {dimension_numbers = #tpu.dot_dimension_numbers<[1], [0], [0], [1], [0, 0, 1, 1], [], []>} : vector<128x128xf32>, vector<128x32xf32>, vector<128x32xf32> -> vector<128x32xf32>
    %c127_i32 = arith.constant 127 : i32
    %8 = tpu.dynamic_rotate %7 by %c127_i32 dim 0 : vector<128x32xf32>, i32 -> vector<128x32xf32>
    %9 = arith.addf %4, %8 : vector<128x32xf32>
    %c2 = arith.constant 2 : index
    %c0_8 = arith.constant 0 : index
    %c0_9 = arith.constant 0 : index
    %10 = vector.load %arg2[%c2, %c0_8, %c0_9] : memref<3x128x32xf32, #tpu.memory_space<vmem>>, vector<1x128x32xf32>
    %11 = vector.shape_cast %10 : vector<1x128x32xf32> to vector<128x32xf32>
    %cst_10 = arith.constant dense<0.000000e+00> : vector<128x32xf32>
    %12 = tpu.matmul %1, %11, %cst_10 {dimension_numbers = #tpu.dot_dimension_numbers<[1], [0], [0], [1], [0, 0, 1, 1], [], []>} : vector<128x128xf32>, vector<128x32xf32>, vector<128x32xf32> -> vector<128x32xf32>
    %c126_i32 = arith.constant 126 : i32
    %13 = tpu.dynamic_rotate %12 by %c126_i32 dim 0 : vector<128x32xf32>, i32 -> vector<128x32xf32>
    %14 = arith.addf %9, %13 : vector<128x32xf32>
    %c0_11 = arith.constant 0 : index
    %c0_12 = arith.constant 0 : index
    %15 = vector.load %arg3[%c0_11, %c0_12] : memref<1x32xf32, #tpu.memory_space<vmem>>, vector<1x32xf32>
    %16 = vector.broadcast %15 : vector<1x32xf32> to vector<128x32xf32>
    %17 = arith.addf %14, %16 : vector<128x32xf32>
    %cst_13 = arith.constant 0.000000e+00 : f32
    %18 = vector.broadcast %cst_13 : f32 to vector<128x32xf32>
    %19 = arith.maximumf %17, %18 : vector<128x32xf32>
    %20 = tpu.iota {dimensions = array<i32: 0>} : vector<128x32xi32>
    %c16_i32 = arith.constant 16 : i32
    %c0_i32 = arith.constant 0 : i32
    %21 = arith.cmpi eq, %c16_i32, %c0_i32 : i32
    %c1_i32 = arith.constant 1 : i32
    %22 = arith.select %21, %c1_i32, %c16_i32 : i32
    %23 = vector.broadcast %22 : i32 to vector<128x32xi32>
    %24 = arith.remsi %20, %23 : vector<128x32xi32>
    %c0_i32_14 = arith.constant 0 : i32
    %25 = vector.broadcast %c0_i32_14 : i32 to vector<128x32xi32>
    %26 = arith.cmpi ne, %24, %25 : vector<128x32xi32>
    %c0_i32_15 = arith.constant 0 : i32
    %27 = vector.broadcast %c0_i32_15 : i32 to vector<128x32xi32>
    %28 = arith.cmpi slt, %24, %27 : vector<128x32xi32>
    %c0_i32_16 = arith.constant 0 : i32
    %29 = arith.cmpi slt, %22, %c0_i32_16 : i32
    %30 = vector.broadcast %29 : i1 to vector<128x32xi1>
    %31 = vector.broadcast %30 : vector<128x32xi1> to vector<128x32xi1>
    %32 = arith.xori %28, %31 : vector<128x32xi1>
    %33 = arith.andi %32, %26 : vector<128x32xi1>
    %34 = vector.broadcast %22 : i32 to vector<128x32xi32>
    %35 = arith.addi %24, %34 : vector<128x32xi32>
    %36 = arith.select %33, %35, %24 : vector<128x32xi1>, vector<128x32xi32>
    %c8_i32 = arith.constant 8 : i32
    %37 = vector.broadcast %c8_i32 : i32 to vector<128x32xi32>
    %38 = arith.cmpi slt, %36, %37 : vector<128x32xi32>
    %cst_17 = arith.constant 0.000000e+00 : f32
    %39 = vector.broadcast %cst_17 : f32 to vector<128x32xf32>
    %40 = arith.select %38, %19, %39 : vector<128x32xi1>, vector<128x32xf32>
    %41 = vector.shape_cast %40 : vector<128x32xf32> to vector<8x16x32xf32>
    %cst_18 = arith.constant dense<0xFF800000> : vector<8x32xf32>
    %42 = vector.multi_reduction <maximumf>, %41, %cst_18 [1] : vector<8x16x32xf32> to vector<8x32xf32>
    %c0_19 = arith.constant 0 : index
    %c0_20 = arith.constant 0 : index
    %43 = vector.load %arg4[%c0_19, %c0_20] : memref<32x128xf32, #tpu.memory_space<vmem>>, vector<32x128xf32>
    %cst_21 = arith.constant dense<0.000000e+00> : vector<8x128xf32>
    %44 = tpu.matmul %42, %43, %cst_21 {dimension_numbers = #tpu.dot_dimension_numbers<[1], [0], [0], [1], [0, 0, 1, 1], [], []>} : vector<8x32xf32>, vector<32x128xf32>, vector<8x128xf32> -> vector<8x128xf32>
    %c0_22 = arith.constant 0 : index
    %c0_23 = arith.constant 0 : index
    %45 = vector.load %arg5[%c0_22, %c0_23] : memref<1x128xf32, #tpu.memory_space<vmem>>, vector<1x128xf32>
    %46 = vector.broadcast %45 : vector<1x128xf32> to vector<8x128xf32>
    %47 = arith.addf %44, %46 : vector<8x128xf32>
    %cst_24 = arith.constant dense<0xFF800000> : vector<8xf32>
    %48 = vector.multi_reduction <maximumf>, %47, %cst_24 [1] : vector<8x128xf32> to vector<8xf32>
    %49 = vector.shape_cast %48 : vector<8xf32> to vector<8x1xf32>
    %50 = vector.broadcast %49 : vector<8x1xf32> to vector<8x128xf32>
    %51 = arith.subf %47, %50 : vector<8x128xf32>
    %52 = math.exp %51 : vector<8x128xf32>
    %cst_25 = arith.constant dense<0.000000e+00> : vector<8xf32>
    %53 = vector.multi_reduction <add>, %52, %cst_25 [1] : vector<8x128xf32> to vector<8xf32>
    %54 = vector.shape_cast %53 : vector<8xf32> to vector<8x1xf32>
    %55 = tpu.reciprocal %54 {approx = true} : vector<8x1xf32> -> vector<8x1xf32>
    %56 = vector.broadcast %55 : vector<8x1xf32> to vector<8x128xf32>
    %57 = arith.mulf %52, %56 : vector<8x128xf32>
    %c0_26 = arith.constant 0 : index
    %c0_27 = arith.constant 0 : index
    %58 = vector.load %arg6[%c0_26, %c0_27] : memref<8x128xf32, #tpu.memory_space<vmem>>, vector<8x128xf32>
    tpu.vector_store %arg6[%c0_26, %c0_27], %57 {strides = array<i32>} : memref<8x128xf32, #tpu.memory_space<vmem>>, vector<8x128xf32>,
    return
  }
  func.func @transform_0(%arg0: i32) -> (i32, i32, i32) {
    %c0_i32 = arith.constant 0 : i32
    %c0_i32_0 = arith.constant 0 : i32
    %c0_i32_1 = arith.constant 0 : i32
    return %arg0, %c0_i32, %c0_i32_0 : i32, i32, i32
  }
  func.func @transform_1(%arg0: i32) -> (i32, i32, i32) {
    %c0_i32 = arith.constant 0 : i32
    %c0_i32_0 = arith.constant 0 : i32
    %c0_i32_1 = arith.constant 0 : i32
    %c0_i32_2 = arith.constant 0 : i32
    return %c0_i32, %c0_i32_0, %c0_i32_1 : i32, i32, i32
  }
  func.func @transform_2(%arg0: i32) -> (i32, i32) {
    %c0_i32 = arith.constant 0 : i32
    %c0_i32_0 = arith.constant 0 : i32
    %c0_i32_1 = arith.constant 0 : i32
    return %c0_i32, %c0_i32_0 : i32, i32
  }
  func.func @transform_3(%arg0: i32) -> (i32, i32) {
    %c0_i32 = arith.constant 0 : i32
    %c0_i32_0 = arith.constant 0 : i32
    %c0_i32_1 = arith.constant 0 : i32
    return %c0_i32, %c0_i32_0 : i32, i32
  }
  func.func @transform_4(%arg0: i32) -> (i32, i32) {
    %c0_i32 = arith.constant 0 : i32
    %c0_i32_0 = arith.constant 0 : i32
    %c0_i32_1 = arith.constant 0 : i32
    return %c0_i32, %c0_i32_0 : i32, i32
  }
  func.func @transform_5(%arg0: i32) -> (i32, i32) {
    %c0_i32 = arith.constant 0 : i32
    %c0_i32_0 = arith.constant 0 : i32
    return %arg0, %c0_i32 : i32, i32
  }
}

</mosaic_0001>

<bundles_post_ra>
// kernel: tpu_custom_call.1
= control target key start
LH: loop header
LB: loop body
LE: loop exit
PB: predicated region body
PF: predicated region fallthrough
CT: control target
= control target key end

     0   :  { %10 = vsyncpa [#allocation3], 0  ;;  %s2349_s0 = inlined_call_operand.vmem [shape: f32[16,16,128], index: 0, kind: input, shape index: {}]   ;;  %s2350_s1 = inlined_call_operand.vmem [shape: f32[3,128,32], index: 1, kind: input, shape index: {}]   ;;  %s2351_s2 = inlined_call_operand.vmem [shape: f32[1,32], index: 2, kind: input, shape index: {}]   ;;  %s2352_s3 = inlined_call_operand.vmem [shape: f32[32,128], index: 3, kind: input, shape index: {}]   ;;  %s2353_s4 = inlined_call_operand.vmem [shape: f32[1,128], index: 4, kind: input, shape index: {}]   ;;  %s2354_s5 = inlined_call_operand.hbm [shape: f32[16,128], index: 5, kind: output, shape index: {}]  }
   0x1   :  { %12 = vsyncpa [#allocation3 + $0x1], 0  ;;  %s1944_s18 = smov 0   ;;  %s1946_s19 = smov 0  }
   0x2   :  { %s1948_s20 = smov 0   ;;  %s1950_s21 = smov 0  }
   0x3 LB: > { %s1965_s22 = sadd.s32 4294967295, %s1907_s21   ;;  %s1352_s23 = sadd.s32 4294967294, %s1907_s21   ;;  %s1907_s21 = sphi %s1950_s21, %s2360_s21   ;;  %s1903_s20 = sphi %s1948_s20, %s2359_s20   ;;  %s1899_s19 = sphi %s1946_s19, %s2358_s19   ;;  %s1895_s18 = sphi %s1944_s18, %s2357_s18  }
   0x4   : > { %s1969_s24 = sadd.s32 1, %s1907_s21   ;;  %s135_s25 = sadd.s32 1, %s1903_s20 }
   0x5   : > { %s132_s26 = ssub.s32 %s1907_s21, %s1969_s24  ;;  %p145_p0 = scmp.ne.s32.totalorder %s1903_s20, %s1899_s19 }
   0x6   : > { %p133_p1 = scmp.eq.s32.totalorder %s132_s26, 0  ;;  %p146_p2 = scmp.eq.s32.totalorder %s1965_s22, 1 }
   0x7   : > { %p151_p3 = scmp.ne.s32.totalorder %s1899_s19, %s1895_s18  ;;  %p152_p4 = scmp.eq.s32.totalorder %s1352_s23, 1 }
   0x8   : > { %s1980_s27 = scalar_select %p133_p1, %s1903_s20, %s135_s25  }
   0x9   : > { %p1982_p5 = por %p146_p2, %p145_p0  ;;  %p1986_p6 = por %p152_p4, %p151_p3 }
   0xa   : > { %p1355_p7 = scmp.ge.s32.totalorder %s1907_s21, 1  ;;  %p192_p8 = scmp.lt.s32.totalorder %s1907_s21, 3 }
   0xc   : > { %p193_p9 = pnand %p1355_p7, %p192_p8 }
   0xd   : > { %v1360_v0 = vld [vmem:[%s2350_s1 + $0x80] sm:$0xff] (!%p193_p9)  ;;  %v1361_v1 = vld [vmem:[%s2350_s1 + $0x88] sm:$0xff] (!%p193_p9)  ;;  %s1357_s11 = sshll.u32 (!%p193_p9), %s1965_s22, 3  ;;  %v1362_v5 = vld [vmem:[%s2350_s1 + $0x90] sm:$0xff] (!%p193_p9)  ;;  %vm1910_vm0 = vmmov (!%p193_p9), 0   ;;  %vm1091_vm3 = vcmask (!%p193_p9), 261120  }
   0xe   : > { %196 = sbr.rel (%p193_p9) target bundleno = 879 (0x36f), region = 40  ;;  %v244_v2 = vld [vmem:[%s2350_s1] sm:$0xff] (!%p193_p9)  ;;  %v1680_v3 = vpack.c.bf16 (!%p193_p9), %v1361_v1, %v1360_v0  ;;  %v245_v4 = vld [vmem:[%s2350_s1 + $0x8] sm:$0xff] (!%p193_p9)  ;;  %v1363_v6 = vld [vmem:[%s2350_s1 + $0x98] sm:$0xff] (!%p193_p9)  ;;  %p222_p10 = scmp.lt.s32.totalorder (!%p193_p9), %s1357_s11, 15  ;;  %vm1183_vm4 = vcmask (!%p193_p9), 1041409  }
   0xf   : > { %v1712_v7 = vpack.c.bf16 (!%p193_p9), %v245_v4, %v244_v2  ;;  %v1684_v8 = vpack.c.bf16 (!%p193_p9), %v1363_v6, %v1362_v5  ;;  %v246_v9 = vld [vmem:[%s2350_s1 + $0x10] sm:$0xff] (!%p193_p9)  ;;  %v247_v10 = vld [vmem:[%s2350_s1 + $0x18] sm:$0xff] (!%p193_p9)  ;;  %v1364_v11 = vld [vmem:[%s2350_s1 + $0xa0] sm:$0xff] (!%p193_p9)  ;;  %vm1185_vm5 = vcmask (!%p193_p9), 1042434   ;;  %vm1187_vm6 = vcmask (!%p193_p9), 1043459   ;;  %s218_s10 = sand.u32 (!%p193_p9), 1, %s1899_s19  }
  0x10   : > { %1681 = vmatprep.subr.bf16.mxu0 (!%p193_p9), %v1680_v3  ;;  %v1716_v12 = vpack.c.bf16 (!%p193_p9), %v247_v10, %v246_v9  ;;  %v1365_v13 = vld [vmem:[%s2350_s1 + $0xa8] sm:$0xff] (!%p193_p9)  ;;  %v248_v14 = vld [vmem:[%s2350_s1 + $0x20] sm:$0xff] (!%p193_p9)  ;;  %v1366_v18 = vld [vmem:[%s2350_s1 + $0xb0] sm:$0xff] (!%p193_p9)  ;;  %vm1189_vm7 = vcmask (!%p193_p9), 1044484   ;;  %vm1191_vm8 = vcmask (!%p193_p9), 1045509   ;;  %vm1193_vm9 = vcmask (!%p193_p9), 1046534  }
  0x11   : > { %v249_v15 = vld [vmem:[%s2350_s1 + $0x28] sm:$0xff] (!%p193_p9)  ;;  %1713 = vmatprep.subr.bf16.mxu1 (!%p193_p9), %v1712_v7  ;;  %1683 = vmatpush3.bf16.msra.mxu0 (!%p193_p9), %v1680_v3  ;;  %v1688_v16 = vpack.c.bf16 (!%p193_p9), %v1365_v13, %v1364_v11  ;;  %v1367_v19 = vld [vmem:[%s2350_s1 + $0xb8] sm:$0xff] (!%p193_p9)  ;;  %v250_v20 = vld [vmem:[%s2350_s1 + $0x30] sm:$0xff] (!%p193_p9)  ;;  %vm1195_vm10 = vcmask (!%p193_p9), 1047559   ;;  %s1356_s12 = sshll.u32 (!%p193_p9), %s218_s10, 3  ;;  %s1396_s13 = sshll.u32 (!%p193_p9), %s1965_s22, 7 }
  0x12   : > { %1715 = vmatpush3.bf16.msra.mxu1 (!%p193_p9), %v1712_v7  ;;  %1685 = vmatprep.subr.bf16.mxu0 (!%p193_p9), %v1684_v8  ;;  %v1720_v17 = vpack.c.bf16 (!%p193_p9), %v249_v15, %v248_v14  ;;  %v251_v21 = vld [vmem:[%s2350_s1 + $0x38] sm:$0xff] (!%p193_p9)  ;;  %v1692_v22 = vpack.c.bf16 (!%p193_p9), %v1367_v19, %v1366_v18  ;;  %v1368_v24 = vld [vmem:[%s2350_s1 + $0xc0] sm:$0xff] (!%p193_p9)  ;;  %v1369_v25 = vld [vmem:[%s2350_s1 + $0xc8] sm:$0xff] (!%p193_p9)  ;;  %s220_s14 = scalar_lea.vmem (!%p193_p9), [#allocation2], %s1356_s12  ;;  %s2307_s17 = scalar_lea.hbm (!%p193_p9), %s2354_s5, %s1396_s13 }
  0x13   : > { %1717 = vmatprep.subr.bf16.mxu1 (!%p193_p9), %v1716_v12  ;;  %v1724_v23 = vpack.c.bf16 (!%p193_p9), %v251_v21, %v250_v20  ;;  %v252_v27 = vld [vmem:[%s2350_s1 + $0x40] sm:$0xff] (!%p193_p9)  ;;  %v253_v28 = vld [vmem:[%s2350_s1 + $0x48] sm:$0xff] (!%p193_p9)  ;;  %v1696_v29 = vpack.c.bf16 (!%p193_p9), %v1369_v25, %v1368_v24  ;;  %v1370_v31 = vld [vmem:[%s2350_s1 + $0xd0] sm:$0xff] (!%p193_p9)  ;;  %s1280_s23 = scalar_lea.sflag (!%p193_p9), [#allocation3], %s218_s10  ;;  %s1913_s22 = smov (!%p193_p9), [#allocation2]  }
  0x14   : > { %v1728_v30 = vpack.c.bf16 (!%p193_p9), %v253_v28, %v252_v27  ;;  %v1371_v32 = vld [vmem:[%s2350_s1 + $0xd8] sm:$0xff] (!%p193_p9)  ;;  %v254_v33 = vld [vmem:[%s2350_s1 + $0x50] sm:$0xff] (!%p193_p9)  ;;  %v1372_v37 = vld [vmem:[%s2350_s1 + $0xe0] sm:$0xff] (!%p193_p9)  ;;  %v1909_v27 = vmov (!%p193_p9), 0.0|0.0   ;;  %s1849_s26 = sshll.u32 (!%p193_p9), %s1913_s22, 4  ;;  %s1850_s26 = int_to_ptr.vmem [resolvable:$false] %s1849_s26 }
  0x15   : > { %s2362_s11 = smov (!%p222_p10, %s1357_s11), 15  ;;  %1687 = vmatpush3.bf16.msra.mxu0 %v1684_v8  ;;  %v255_v34 = vld [vmem:[%s2350_s1 + $0x58] sm:$0xff]  ;;  %v1700_v35 = vpack.c.bf16 %v1371_v32, %v1370_v31  ;;  %v1373_v38 = vld [vmem:[%s2350_s1 + $0xe8] sm:$0xff]  ;;  %v256_v39 = vld [vmem:[%s2350_s1 + $0x60] sm:$0xff]  ;;  %v1911_v31 = vmov 0.0   ;;  %v438_v32 = vlaneseq  ;;  %s1851_s30 = scalar_lea.vmem %s1850_s26, 256 }
  0x16   : > { %s1399_s15 = sshll.u32 %s2362_s11, 4  ;;  %1719 = vmatpush3.bf16.msra.mxu1 %v1716_v12  ;;  %1689 = vmatprep.subr.bf16.mxu0 %v1688_v16  ;;  %v1732_v36 = vpack.c.bf16 %v255_v34, %v254_v33  ;;  %v257_v40 = vld [vmem:[%s2350_s1 + $0x68] sm:$0xff]  ;;  %v1704_v41 = vpack.c.bf16 %v1373_v38, %v1372_v37  ;;  %v1374_v43 = vld [vmem:[%s2350_s1 + $0xf0] sm:$0xff]  ;;  %v1375_v44 = vld [vmem:[%s2350_s1 + $0xf8] sm:$0xff] }
  0x17   : > { %s2044_s9 = scalar_lea.vmem %s2349_s0, %s1399_s15  ;;  %1721 = vmatprep.subr.bf16.mxu1 %v1720_v17  ;;  %v1736_v42 = vpack.c.bf16 %v257_v40, %v256_v39  ;;  %v258_v45 = vld [vmem:[%s2350_s1 + $0x70] sm:$0xff]  ;;  %v259_v46 = vld [vmem:[%s2350_s1 + $0x78] sm:$0xff]  ;;  %v1708_v47 = vpack.c.bf16 %v1375_v44, %v1374_v43  ;;  %v1376_v49 = vld [vmem:[%s2350_s1 + $0x100] sm:$0xff]  ;;  %v2215_v33 = vshrl.u32 %v438_v32, 7 }
  0x18   : > { %v2053_v26 = vld [vmem:[%s2044_s9] sm:$0xff]  ;;  %v1740_v48 = vpack.c.bf16 %v259_v46, %v258_v45  ;;  %v1377_v50 = vld [vmem:[%s2350_s1 + $0x108] sm:$0xff]  ;;  %v1378_v52 = vld [vmem:[%s2350_s1 + $0x110] sm:$0xff] }
  0x19   : > { %1533 = vmatprep.mubr.f32.mxu0 %v2053_v26  ;;  %1589 = vmatprep.mubr.f32.mxu1 %v2053_v26  ;;  %v1744_v51 = vpack.c.bf16 %v1377_v50, %v1376_v49  ;;  %v1379_v53 = vld [vmem:[%s2350_s1 + $0x118] sm:$0xff]  ;;  %v2112_v54 = vld [vmem:[%s2044_s9 + $0x8] sm:$0xff]  ;;  %v2115_v55 = vld [vmem:[%s2044_s9 + $0x10] sm:$0xff]  ;;  %vm440_vm1 = vcmp.lt.s32.totalorder %v2215_v33, 7  ;;  %vm780_vm2 = vcmp.lt.s32.totalorder %v2215_v33, 6 }
  0x1a   : > { %1691 = vmatpush3.bf16.msra.mxu0 %v1688_v16  ;;  %1723 = vmatpush3.bf16.msra.mxu1 %v1720_v17  ;;  %v1748_v56 = vpack.c.bf16 %v1379_v53, %v1378_v52  ;;  %v1380_v57 = vld [vmem:[%s2350_s1 + $0x120] sm:$0xff]  ;;  %v1381_v58 = vld [vmem:[%s2350_s1 + $0x128] sm:$0xff]  ;;  %v2126_v59 = vld [vmem:[%s2044_s9 + $0x18] sm:$0xff] }
  0x1b   : > { %1693 = vmatprep.subr.bf16.mxu0 %v1692_v22  ;;  %1725 = vmatprep.subr.bf16.mxu1 %v1724_v23  ;;  %v2131_v60 = vld [vmem:[%s2044_s9 + $0x20] sm:$0xff]  ;;  %v1752_v61 = vpack.c.bf16 %v1381_v58, %v1380_v57  ;;  %v1382_v62 = vld [vmem:[%s2350_s1 + $0x130] sm:$0xff]  ;;  %v1383_v63 = vld [vmem:[%s2350_s1 + $0x138] sm:$0xff] }
  0x1c   : > { %v2142_v0 = vld [vmem:[%s2044_s9 + $0x28] sm:$0xff]  ;;  %v2147_v1 = vld [vmem:[%s2044_s9 + $0x30] sm:$0xff]  ;;  %v1756_v2 = vpack.c.bf16 %v1383_v63, %v1382_v62  ;;  %v1384_v3 = vld [vmem:[%s2350_s1 + $0x140] sm:$0xff] }
  0x1d   : > { %v1385_v4 = vld [vmem:[%s2350_s1 + $0x148] sm:$0xff]  ;;  %v2158_v5 = vld [vmem:[%s2044_s9 + $0x38] sm:$0xff]  ;;  %v2163_v6 = vld [vmem:[%s2044_s9 + $0x40] sm:$0xff] }
  0x1e   : > { %1695 = vmatpush3.bf16.msra.mxu0 %v1692_v22  ;;  %1727 = vmatpush3.bf16.msra.mxu1 %v1724_v23  ;;  %v1760_v7 = vpack.c.bf16 %v1385_v4, %v1384_v3  ;;  %v1386_v8 = vld [vmem:[%s2350_s1 + $0x150] sm:$0xff]  ;;  %v1387_v9 = vld [vmem:[%s2350_s1 + $0x158] sm:$0xff]  ;;  %v237_v10 = vld [vmem:[%s2044_s9 + $0x48] sm:$0xff] }
  0x1f   : > { %1697 = vmatprep.subr.bf16.mxu0 %v1696_v29  ;;  %1729 = vmatprep.subr.bf16.mxu1 %v1728_v30  ;;  %v238_v11 = vld [vmem:[%s2044_s9 + $0x50] sm:$0xff]  ;;  %v1764_v12 = vpack.c.bf16 %v1387_v9, %v1386_v8  ;;  %v1388_v13 = vld [vmem:[%s2350_s1 + $0x160] sm:$0xff]  ;;  %v1389_v14 = vld [vmem:[%s2350_s1 + $0x168] sm:$0xff] }
  0x20   : > { %v239_v15 = vld [vmem:[%s2044_s9 + $0x58] sm:$0xff]  ;;  %v240_v16 = vld [vmem:[%s2044_s9 + $0x60] sm:$0xff]  ;;  %v1768_v17 = vpack.c.bf16 %v1389_v14, %v1388_v13  ;;  %v1390_v18 = vld [vmem:[%s2350_s1 + $0x170] sm:$0xff] }
  0x21   : > { %v1391_v19 = vld [vmem:[%s2350_s1 + $0x178] sm:$0xff]  ;;  %v241_v20 = vld [vmem:[%s2044_s9 + $0x68] sm:$0xff]  ;;  %v242_v21 = vld [vmem:[%s2044_s9 + $0x70] sm:$0xff] }
  0x22   : > { %1699 = vmatpush3.bf16.msra.mxu0 %v1696_v29  ;;  %1731 = vmatpush3.bf16.msra.mxu1 %v1728_v30  ;;  %v1772_v22 = vpack.c.bf16 %v1391_v19, %v1390_v18  ;;  %v243_v23 = vld [vmem:[%s2044_s9 + $0x78] sm:$0xff]  ;;  %v1164_v24 = vld [vmem:[%s2352_s3] sm:$0xff]  ;;  %v1165_v25 = vld [vmem:[%s2352_s3 + $0x8] sm:$0xff]  ;;  %s1293_s9 = sshll.u32 %s220_s14, 4  ;;  %s2309_s9 = int_to_ptr.vmem [resolvable:$true] %s1293_s9 }
  0x23   : > { %1701 = vmatprep.subr.bf16.mxu0 %v1700_v35  ;;  %1733 = vmatprep.subr.bf16.mxu1 %v1732_v36  ;;  %v1166_v28 = vld [vmem:[%s2352_s3 + $0x10] sm:$0xff]  ;;  %v1167_v29 = vld [vmem:[%s2352_s3 + $0x18] sm:$0xff]  ;;  %s1845_s25 = scalar_lea.vmem %s2309_s9, 128  ;;  %p1852_p0 = scmp.lt.s32.totalorder %s2309_s9, %s1850_s26 }
  0x24   : > { %v1780_v30 = vpack.c.bf16 %v1167_v29, %v1166_v28  ;;  %p1846_p11 = scmp.ne.s32.totalorder %s2309_s9, %s1845_s25  ;;  %p1853_p1 = scmp.lt.s32.totalorder %s1851_s30, %s1845_s25 }
  0x26   : > { %1703 = vmatpush3.bf16.msra.mxu0 %v1700_v35  ;;  %1735 = vmatpush3.bf16.msra.mxu1 %v1732_v36  ;;  %p1847_p12 = pnand %p1846_p11, %p1982_p5  ;;  %p1854_p2 = por %p1853_p1, %p1852_p0 }
  0x27   : > { %1705 = vmatprep.subr.bf16.mxu0 %v1704_v41  ;;  %1737 = vmatprep.subr.bf16.mxu1 %v1736_v42 }
  0x28   : > { %p1848_p13 = pneg %p1847_p12 }
  0x2a   : > { %1707 = vmatpush3.bf16.msra.mxu0 %v1704_v41  ;;  %1739 = vmatpush3.bf16.msra.mxu1 %v1736_v42  ;;  %p1855_p3 = pnand %p1854_p2, %p1848_p13 }
  0x2b   : > { %1709 = vmatprep.subr.bf16.mxu0 %v1708_v47  ;;  %1741 = vmatprep.subr.bf16.mxu1 %v1740_v48 }
  0x2e   : > { %1711 = vmatpush3.bf16.msra.mxu0 %v1708_v47  ;;  %1743 = vmatpush3.bf16.msra.mxu1 %v1740_v48 }
  0x2f   : > { %1745 = vmatprep.subr.bf16.mxu0 %v1744_v51  ;;  %1782 = vmatprep.subr.bf16.mxu1 %v1744_v51 }
  0x31   : > { %1534 = vmatmul.mubr.f32.vlgmr.msra.gmra.mrb[0].mxu0 %v2112_v54  ;;  %1590 = vmatmul.mubr.f32.vlgmr.msra.gmra.mrb[0].mxu1 %v2112_v54 }
  0x32   : > { %1747 = vmatpush3.bf16.msra.mxu0 %v1744_v51  ;;  %1790 = vmatpush3.bf16.msra.mxu1 %v1744_v51 }
  0x33   : > { %1536 = vmatprep.mubr.f32.mxu0 %v2115_v55  ;;  %1592 = vmatprep.mubr.f32.mxu1 %v2115_v55 }
  0x34   : > { %1749 = vmatprep.subr.bf16.mxu0 %v1748_v56  ;;  %1783 = vmatprep.subr.bf16.mxu1 %v1748_v56 }
  0x35   : > { %1537 = vmatmul.mubr.f32.gmra.mrb[2].mxu0 %v2126_v59  ;;  %1593 = vmatmul.mubr.f32.gmra.mrb[2].mxu1 %v2126_v59 }
  0x36   : > { %1751 = vmatpush3.bf16.msra.mxu0 %v1748_v56  ;;  %1791 = vmatpush3.bf16.msra.mxu1 %v1748_v56 }
  0x37   : > { %1539 = vmatprep.mubr.f32.mxu0 %v2131_v60  ;;  %1595 = vmatprep.mubr.f32.mxu1 %v2131_v60 }
  0x38   : > { %1753 = vmatprep.subr.bf16.mxu0 %v1752_v61  ;;  %1784 = vmatprep.subr.bf16.mxu1 %v1752_v61 }
  0x39   : > { %1540 = vmatmul.mubr.f32.gmra.mrb[4].mxu0 %v2142_v0  ;;  %1596 = vmatmul.mubr.f32.gmra.mrb[4].mxu1 %v2142_v0 }
  0x3a   : > { %1755 = vmatpush3.bf16.msra.mxu0 %v1752_v61  ;;  %1792 = vmatpush3.bf16.msra.mxu1 %v1752_v61 }
  0x3b   : > { %1542 = vmatprep.mubr.f32.mxu0 %v2147_v1  ;;  %1598 = vmatprep.mubr.f32.mxu1 %v2147_v1 }
  0x3c   : > { %1757 = vmatprep.subr.bf16.mxu0 %v1756_v2  ;;  %1785 = vmatprep.subr.bf16.mxu1 %v1756_v2 }
  0x3d   : > { %1543 = vmatmul.mubr.f32.gmra.mrb[6].mxu0 %v2158_v5  ;;  %1599 = vmatmul.mubr.f32.gmra.mrb[6].mxu1 %v2158_v5 }
  0x3e   : > { %1759 = vmatpush3.bf16.msra.mxu0 %v1756_v2  ;;  %1793 = vmatpush3.bf16.msra.mxu1 %v1756_v2 }
  0x3f   : > { %1545 = vmatprep.mubr.f32.mxu0 %v2163_v6  ;;  %1601 = vmatprep.mubr.f32.mxu1 %v2163_v6 }
  0x40   : > { %1761 = vmatprep.subr.bf16.mxu0 %v1760_v7  ;;  %1786 = vmatprep.subr.bf16.mxu1 %v1760_v7 }
  0x41   : > { %1546 = vmatmul.mubr.f32.gmra.mrb[8].mxu0 %v237_v10  ;;  %1602 = vmatmul.mubr.f32.gmra.mrb[8].mxu1 %v237_v10 }
  0x42   : > { %1763 = vmatpush3.bf16.msra.mxu0 %v1760_v7  ;;  %1794 = vmatpush3.bf16.msra.mxu1 %v1760_v7 }
  0x43   : > { %1548 = vmatprep.mubr.f32.mxu0 %v238_v11  ;;  %1604 = vmatprep.mubr.f32.mxu1 %v238_v11 }
  0x44   : > { %1765 = vmatprep.subr.bf16.mxu0 %v1764_v12  ;;  %1787 = vmatprep.subr.bf16.mxu1 %v1764_v12 }
  0x45   : > { %1549 = vmatmul.mubr.f32.gmra.mrb[10].mxu0 %v239_v15  ;;  %1605 = vmatmul.mubr.f32.gmra.mrb[10].mxu1 %v239_v15 }
  0x46   : > { %1767 = vmatpush3.bf16.msra.mxu0 %v1764_v12  ;;  %1795 = vmatpush3.bf16.msra.mxu1 %v1764_v12 }
  0x47   : > { %1551 = vmatprep.mubr.f32.mxu0 %v240_v16  ;;  %1607 = vmatprep.mubr.f32.mxu1 %v240_v16 }
  0x48   : > { %1769 = vmatprep.subr.bf16.mxu0 %v1768_v17  ;;  %1788 = vmatprep.subr.bf16.mxu1 %v1768_v17 }
  0x49   : > { %1552 = vmatmul.mubr.f32.gmra.mrb[12].mxu0 %v241_v20  ;;  %1608 = vmatmul.mubr.f32.gmra.mrb[12].mxu1 %v241_v20 }
  0x4a   : > { %1771 = vmatpush3.bf16.msra.mxu0 %v1768_v17  ;;  %1796 = vmatpush3.bf16.msra.mxu1 %v1768_v17 }
  0x4b   : > { %1554 = vmatprep.mubr.f32.mxu0 %v242_v21  ;;  %1610 = vmatprep.mubr.f32.mxu1 %v242_v21 }
  0x4c   : > { %1773 = vmatprep.subr.bf16.mxu0 %v1772_v22  ;;  %1789 = vmatprep.subr.bf16.mxu1 %v1772_v22 }
  0x4d   : > { %1555 = vmatmul.mubr.f32.gmra.mrb[14].mxu0 %v243_v23  ;;  %1611 = vmatmul.mubr.f32.gmra.mrb[14].mxu1 %v243_v23 }
  0x4e   : > { %1775 = vmatpush3.bf16.msra.mxu0 %v1772_v22  ;;  %1797 = vmatpush3.bf16.msra.mxu1 %v1772_v22 }
  0x4f   : > { %1645 = vmatprep.mubr.f32.mxu0 %v2053_v26  ;;  %1660 = vmatprep.mubr.f32.mxu1 %v238_v11  ;;  %v1777_v26 = vpack.c.bf16 %v1165_v25, %v1164_v24 }
  0x50   : > { %1776 = vmatprep.subr.bf16.mxu1 %v1909_v27 }
  0x51   : > { %1646 = vmatmul.mubr.f32.vlgmr.msra.gmra.mrb[16].mxu0 %v2112_v54  ;;  %1661 = vmatmul.mubr.f32.vlgmr.msra.gmra.mrb[16].mxu1 %v239_v15 }
  0x52   : > { %1648 = vmatprep.mubr.f32.mxu0 %v2115_v55  ;;  %1663 = vmatprep.mubr.f32.mxu1 %v240_v16 }
  0x53   : > { %1778 = vmatpush3.bf16.msra.mxu1 %v1777_v26 }
  0x54   : > { %1779 = vmatprep.subr.bf16.mxu1 %v1909_v27 }
  0x55   : > { %1649 = vmatmul.mubr.f32.gmra.mrb[18].mxu0 %v2126_v59  ;;  %1664 = vmatmul.mubr.f32.gmra.mrb[18].mxu1 %v241_v20 }
  0x56   : > { %1651 = vmatprep.mubr.f32.mxu0 %v2131_v60  ;;  %1666 = vmatprep.mubr.f32.mxu1 %v242_v21 }
  0x57   : > { %1781 = vmatpush3.bf16.msra.mxu1 %v1780_v30 }
  0x59   : > { %1652 = vmatmul.mubr.f32.gmra.mrb[20].mxu0 %v2142_v0  ;;  %1667 = vmatmul.mubr.f32.gmra.mrb[20].mxu1 %v243_v23 }
  0x5a   : > { %1654 = vmatprep.mubr.f32.mxu0 %v2147_v1  ;;  %1677 = vmatprep.mubr.msk.f32.mxu1 %vm1910_vm0, %v1911_v31 }
  0x5d   : > { %1655 = vmatmul.mubr.f32.gmra.mrb[22].mxu0 %v2158_v5 }
  0x5e   : > { %1657 = vmatprep.mubr.f32.mxu0 %v2163_v6 }
  0x61   : > { %1658 = vmatmul.mubr.f32.gmra.mrb[24].mxu0 %v237_v10 }
 0x104   : > { %v1535_v34 = vpop.f32.mrb[0].mxu0  ;;  %v1591_v37 = vpop.f32.mrb[0].mxu1 }
 0x105   : > { %v423_v35 = vrot.slane %v1535_v34, 1  ;;  %v343_v36 = vpop.f32.mrb[1].mxu0  ;;  %v523_v39 = vpop.f32.mrb[1].mxu1 }
 0x106   : > { %v422_v38 = vrot.slane %v343_v36, 1 }
 0x108   : > { %v1538_v40 = vpop.f32.mrb[2].mxu0  ;;  %v455_v41 = vsel %vm440_vm1, %v422_v38, %v423_v35  ;;  %v1594_v45 = vpop.f32.mrb[2].mxu1 }
 0x109   : > { %v425_v42 = vrot.slane %v1538_v40, 1  ;;  %v2220_v43 = vadd.f32 %v523_v39, %v455_v41  ;;  %v353_v44 = vpop.f32.mrb[3].mxu0  ;;  %v533_v47 = vpop.f32.mrb[3].mxu1  ;;  %v2250_v45 = vld [vmem:[%s2351_s2] ss:$0 sm:$0xff] }
 0x10a   : > { %v424_v46 = vrot.slane %v353_v44, 1 }
 0x10c   : > { %v1541_v48 = vpop.f32.mrb[4].mxu0  ;;  %v453_v49 = vsel %vm440_vm1, %v424_v46, %v425_v42  ;;  %v1597_v53 = vpop.f32.mrb[4].mxu1 }
 0x10d   : > { %v427_v50 = vrot.slane %v1541_v48, 1  ;;  %v2224_v51 = vadd.f32 %v533_v47, %v453_v49  ;;  %v363_v52 = vpop.f32.mrb[5].mxu0  ;;  %v543_v55 = vpop.f32.mrb[5].mxu1 }
 0x10e   : > { %v426_v54 = vrot.slane %v363_v52, 1 }
 0x110   : > { %v1544_v56 = vpop.f32.mrb[6].mxu0  ;;  %v451_v57 = vsel %vm440_vm1, %v426_v54, %v427_v50  ;;  %v1600_v61 = vpop.f32.mrb[6].mxu1 }
 0x111   : > { %v429_v58 = vrot.slane %v1544_v56, 1  ;;  %v2228_v59 = vadd.f32 %v543_v55, %v451_v57  ;;  %v373_v60 = vpop.f32.mrb[7].mxu0  ;;  %v553_v63 = vpop.f32.mrb[7].mxu1 }
 0x112   : > { %v428_v62 = vrot.slane %v373_v60, 1  ;;  %v1912_v60 = vmov -inf  }
 0x113   : > { %v2257_v61 = vsel %vm1091_vm3, 0.0, %v1912_v60 }
 0x114   : > { %v1547_v0 = vpop.f32.mrb[8].mxu0  ;;  %v449_v1 = vsel %vm440_vm1, %v428_v62, %v429_v58  ;;  %v1603_v5 = vpop.f32.mrb[8].mxu1 }
 0x115   : > { %v431_v2 = vrot.slane %v1547_v0, 1  ;;  %v2232_v3 = vadd.f32 %v553_v63, %v449_v1  ;;  %v383_v4 = vpop.f32.mrb[9].mxu0  ;;  %v563_v7 = vpop.f32.mrb[9].mxu1 }
 0x116   : > { %v430_v6 = vrot.slane %v383_v4, 1 }
 0x118   : > { %v1550_v8 = vpop.f32.mrb[10].mxu0  ;;  %v447_v9 = vsel %vm440_vm1, %v430_v6, %v431_v2  ;;  %v1606_v13 = vpop.f32.mrb[10].mxu1 }
 0x119   : > { %v433_v10 = vrot.slane %v1550_v8, 1  ;;  %v2236_v11 = vadd.f32 %v563_v7, %v447_v9  ;;  %v393_v12 = vpop.f32.mrb[11].mxu0  ;;  %v573_v15 = vpop.f32.mrb[11].mxu1 }
 0x11a   : > { %v432_v14 = vrot.slane %v393_v12, 1 }
 0x11c   : > { %v1553_v16 = vpop.f32.mrb[12].mxu0  ;;  %v445_v17 = vsel %vm440_vm1, %v432_v14, %v433_v10  ;;  %v1609_v21 = vpop.f32.mrb[12].mxu1 }
 0x11d   : > { %v435_v18 = vrot.slane %v1553_v16, 1  ;;  %v574_v19 = vadd.f32 %v573_v15, %v445_v17  ;;  %v403_v20 = vpop.f32.mrb[13].mxu0  ;;  %v583_v23 = vpop.f32.mrb[13].mxu1 }
 0x11e   : > { %v434_v22 = vrot.slane %v403_v20, 1 }
 0x120   : > { %v1556_v24 = vpop.f32.mrb[14].mxu0  ;;  %v443_v25 = vsel %vm440_vm1, %v434_v22, %v435_v18  ;;  %v1612_v29 = vpop.f32.mrb[14].mxu1 }
 0x121   : > { %v437_v26 = vrot.slane %v1556_v24, 1  ;;  %v584_v27 = vadd.f32 %v583_v23, %v443_v25  ;;  %v413_v28 = vpop.f32.mrb[15].mxu0  ;;  %v593_v31 = vpop.f32.mrb[15].mxu1 }
 0x122   : > { %v436_v30 = vrot.slane %v413_v28, 1 }
 0x124   : > { %v441_v32 = vsel %vm440_vm1, %v436_v30, %v437_v26  ;;  %v1647_v34 = vpop.f32.mrb[16].mxu0  ;;  %v1662_v37 = vpop.f32.mrb[16].mxu1 }
 0x125   : > { %v594_v35 = vadd.f32 %v593_v31, %v441_v32  ;;  %v765_v36 = vrot.slane %v1647_v34, 2  ;;  %v685_v38 = vpop.f32.mrb[17].mxu0  ;;  %v775_v39 = vrot.slane %v1662_v37, 2  ;;  %v735_v41 = vpop.f32.mrb[17].mxu1 }
 0x126   : > { %v764_v40 = vrot.slane %v685_v38, 2  ;;  %v774_v42 = vrot.slane %v735_v41, 2 }
 0x128   : > { %v795_v44 = vsel %vm780_vm2, %v764_v40, %v765_v36  ;;  %v1650_v46 = vpop.f32.mrb[18].mxu0  ;;  %v785_v48 = vsel %vm780_vm2, %v774_v42, %v775_v39  ;;  %v1665_v50 = vpop.f32.mrb[18].mxu1 }
 0x129   : > { %v797_v47 = vadd.f32 %v795_v44, %v2220_v43  ;;  %v767_v49 = vrot.slane %v1650_v46, 2  ;;  %v695_v52 = vpop.f32.mrb[19].mxu0  ;;  %v807_v53 = vadd.f32 %v785_v48, %v574_v19  ;;  %v777_v54 = vrot.slane %v1665_v50, 2  ;;  %v745_v56 = vpop.f32.mrb[19].mxu1 }
 0x12a   : > { %v766_v55 = vrot.slane %v695_v52, 2  ;;  %v776_v58 = vrot.slane %v745_v56, 2 }
 0x12b   : > { %v820_v57 = vadd.f32 %v2250_v45, %v797_v47  ;;  %v830_v62 = vadd.f32 %v2250_v45, %v807_v53 }
 0x12c   : > { %v793_v43 = vsel %vm780_vm2, %v766_v55, %v767_v49  ;;  %v1653_v63 = vpop.f32.mrb[20].mxu0  ;;  %v783_v2 = vsel %vm780_vm2, %v776_v58, %v777_v54  ;;  %v1668_v5 = vpop.f32.mrb[20].mxu1 }
 0x12d   : > { %v836_v0 = vmax.f32 %v820_v57, 0.0  ;;  %v799_v1 = vadd.f32 %v793_v43, %v2224_v51  ;;  %v769_v4 = vrot.slane %v1653_v63, 2  ;;  %v705_v6 = vpop.f32.mrb[21].mxu0  ;;  %v809_v7 = vadd.f32 %v783_v2, %v584_v27  ;;  %v755_v10 = vpop.f32.mrb[21].mxu1 }
 0x12e   : > { %v779_v8 = vrot.slane %v1668_v5, 2  ;;  %v768_v9 = vrot.slane %v705_v6, 2  ;;  %v778_v14 = vrot.slane %v755_v10, 2  ;;  %v846_v18 = vmax.f32 %v830_v62, 0.0 }
 0x12f   : > { %v1092_v12 = vsel %vm1091_vm3, %v836_v0, -inf  ;;  %v822_v13 = vadd.f32 %v2250_v45, %v799_v1  ;;  %v832_v16 = vadd.f32 %v2250_v45, %v809_v7 }
 0x130   : > { %v1094_v15 = vmax.f32 %v1092_v12, %v2257_v61  ;;  %v791_v51 = vsel %vm780_vm2, %v768_v9, %v769_v4  ;;  %v1656_v17 = vpop.f32.mrb[22].mxu0  ;;  %v781_v21 = vsel %vm780_vm2, %v778_v14, %v779_v8 }
 0x131   : > { %v838_v19 = vmax.f32 %v822_v13, 0.0  ;;  %v801_v20 = vadd.f32 %v791_v51, %v2228_v59  ;;  %v715_v22 = vpop.f32.mrb[23].mxu0  ;;  %v811_v24 = vadd.f32 %v781_v21, %v594_v35  ;;  %v771_v25 = vrot.slane %v1656_v17, 2 }
 0x132   : > { %v1095_v23 = vrot.slane %v1094_v15, 4  ;;  %v848_v27 = vmax.f32 %v832_v16, 0.0  ;;  %v770_v29 = vrot.slane %v715_v22, 2  ;;  %v1137_v59 = vsel %vm1091_vm3, %v846_v18, -inf }
 0x133   : > { %v1101_v26 = vsel %vm1091_vm3, %v838_v19, -inf  ;;  %v824_v28 = vadd.f32 %v2250_v45, %v801_v20  ;;  %v834_v32 = vadd.f32 %v2250_v45, %v811_v24  ;;  %v1139_v52 = vmax.f32 %v1137_v59, %v2257_v61 }
 0x134   : > { %v1096_v30 = vmax.f32 %v1094_v15, %v1095_v23  ;;  %v1103_v31 = vmax.f32 %v1101_v26, %v2257_v61  ;;  %v1659_v34 = vpop.f32.mrb[24].mxu0  ;;  %v789_v37 = vsel %vm780_vm2, %v770_v29, %v771_v25  ;;  %v1146_v42 = vsel %vm1091_vm3, %v848_v27, -inf }
 0x135   : > { %v840_v36 = vmax.f32 %v824_v28, 0.0  ;;  %v725_v35 = vpop.f32.mrb[25].mxu0  ;;  %v850_v40 = vmax.f32 %v834_v32, 0.0  ;;  %v803_v41 = vadd.f32 %v789_v37, %v2232_v3  ;;  %v773_v46 = vrot.slane %v1659_v34, 2 }
 0x136   : > { %v1097_v38 = vrot.slane %v1096_v30, 2  ;;  %v1104_v39 = vrot.slane %v1103_v31, 4  ;;  %v1148_v55 = vmax.f32 %v1146_v42, %v2257_v61  ;;  %v772_v3 = vrot.slane %v725_v35, 2 }
 0x137   : > { %v1110_v44 = vsel %vm1091_vm3, %v840_v36, -inf  ;;  %v1155_v50 = vsel %vm1091_vm3, %v850_v40, -inf  ;;  %v826_v53 = vadd.f32 %v2250_v45, %v803_v41  ;;  %v1140_v0 = vrot.slane %v1139_v52, 4 }
 0x138   : > { %v1098_v47 = vmax.f32 %v1096_v30, %v1097_v38  ;;  %v1105_v48 = vmax.f32 %v1103_v31, %v1104_v39  ;;  %v1112_v49 = vmax.f32 %v1110_v44, %v2257_v61  ;;  %v1157_v57 = vmax.f32 %v1155_v50, %v2257_v61  ;;  %v1393_v50 = vld [vmem:[%s2353_s4] ss:$0 sm:$0xff] }
 0x139   : > { %v842_v58 = vmax.f32 %v826_v53, 0.0  ;;  %v787_v63 = vsel %vm780_vm2, %v772_v3, %v773_v46  ;;  %v1149_v5 = vrot.slane %v1148_v55, 4  ;;  %v1141_v33 = vmax.f32 %v1139_v52, %v1140_v0 }
 0x13a   : > { %v1106_v54 = vrot.slane %v1105_v48, 2  ;;  %v1113_v56 = vrot.slane %v1112_v49, 4  ;;  %v1099_v60 = vrot.slane %v1098_v47, 1  ;;  %v805_v2 = vadd.f32 %v787_v63, %v2236_v11 }
 0x13b   : > { %v1119_v1 = vsel %vm1091_vm3, %v842_v58, -inf  ;;  %v1158_v8 = vrot.slane %v1157_v57, 4  ;;  %v1150_v16 = vmax.f32 %v1148_v55, %v1149_v5 }
 0x13c   : > { %v1107_v62 = vmax.f32 %v1105_v48, %v1106_v54  ;;  %v1114_v43 = vmax.f32 %v1112_v49, %v1113_v56  ;;  %v1121_v7 = vmax.f32 %v1119_v1, %v2257_v61  ;;  %v828_v9 = vadd.f32 %v2250_v45, %v805_v2 }
 0x13d   : > { %v1100_v10 = vmax.f32 %v1098_v47, %v1099_v60  ;;  %v1159_v11 = vmax.f32 %v1157_v57, %v1158_v8  ;;  %v1142_v45 = vrot.slane %v1141_v33, 2  ;;  %v1151_v23 = vrot.slane %v1150_v16, 2 }
 0x13e   : > { %v1108_v4 = vrot.slane %v1107_v62, 1  ;;  %v1115_v6 = vrot.slane %v1114_v43, 2  ;;  %v1122_v14 = vrot.slane %v1121_v7, 4  ;;  %v844_v15 = vmax.f32 %v828_v9, 0.0 }
 0x13f   : > { %v1160_v27 = vrot.slane %v1159_v11, 2  ;;  %v1143_v30 = vmax.f32 %v1141_v33, %v1142_v45  ;;  %v1152_v31 = vmax.f32 %v1150_v16, %v1151_v23 }
 0x140   : > { %v1109_v12 = vmax.f32 %v1107_v62, %v1108_v4  ;;  %v1116_v13 = vmax.f32 %v1114_v43, %v1115_v6  ;;  %v1123_v17 = vmax.f32 %v1121_v7, %v1122_v14  ;;  %v1128_v19 = vsel %vm1091_vm3, %v844_v15, -inf }
 0x141   : > { %v1130_v22 = vmax.f32 %v1128_v19, %v2257_v61  ;;  %v1161_v59 = vmax.f32 %v1159_v11, %v1160_v27  ;;  %v1144_v35 = vrot.slane %v1143_v30, 1  ;;  %v1153_v39 = vrot.slane %v1152_v31, 1 }
 0x142   : > { %v1117_v51 = vrot.slane %v1116_v13, 1  ;;  %v1184_v18 = vsel %vm1183_vm4, %v1109_v12, %v1100_v10  ;;  %v1124_v21 = vrot.slane %v1123_v17, 2 }
 0x143   : > { %v1131_v25 = vrot.slane %v1130_v22, 4  ;;  %v1162_v61 = vrot.slane %v1161_v59, 1  ;;  %v1145_v41 = vmax.f32 %v1143_v30, %v1144_v35  ;;  %v1154_v42 = vmax.f32 %v1152_v31, %v1153_v39 }
 0x144   : > { %v1118_v20 = vmax.f32 %v1116_v13, %v1117_v51  ;;  %v1125_v24 = vmax.f32 %v1123_v17, %v1124_v21 }
 0x145   : > { %v1132_v29 = vmax.f32 %v1130_v22, %v1131_v25  ;;  %v1163_v46 = vmax.f32 %v1161_v59, %v1162_v61 }
 0x146   : > { %v1186_v26 = vsel %vm1185_vm5, %v1118_v20, %v1184_v18  ;;  %v1126_v28 = vrot.slane %v1125_v24, 1 }
 0x147   : > { %v1133_v34 = vrot.slane %v1132_v29, 2 }
 0x148   : > { %v1127_v32 = vmax.f32 %v1125_v24, %v1126_v28 }
 0x149   : > { %v1134_v36 = vmax.f32 %v1132_v29, %v1133_v34 }
 0x14a   : > { %v1188_v37 = vsel %vm1187_vm6, %v1127_v32, %v1186_v26 }
 0x14b   : > { %v1135_v38 = vrot.slane %v1134_v36, 1 }
 0x14d   : > { %v1136_v40 = vmax.f32 %v1134_v36, %v1135_v38 }
 0x14f   : > { %v1190_v44 = vsel %vm1189_vm7, %v1136_v40, %v1188_v37 }
 0x150   : > { %v1192_v47 = vsel %vm1191_vm8, %v1145_v41, %v1190_v44 }
 0x151   : > { %v1194_v48 = vsel %vm1193_vm9, %v1154_v42, %v1192_v47 }
 0x152   : > { %v1196_v49 = vsel %vm1195_vm10, %v1163_v46, %v1194_v48 }
 0x153   : > { %1678 = vmatmul.mubr.msk.f32.vlgmr.msra.gmra.mrb[22].mxu1 %vm1091_vm3, %v1196_v49 }
 0x226   : > { %v1265_v52 = vpop.f32.mrb[22].mxu1 }
 0x227   : > { %v1266_v53 = vadd.f32 %v1393_v50, %v1265_v52  ;;  %v1679_v54 = vpop.f32.mrb[23].mxu1 }
 0x229   : > { %1269 = vmax.xlane.f32.xlu0 %v1266_v53 }
 0x2b6   : > { %v1270_v55 = vpop.xlane.xlu0 %1269 }
 0x2b7   : > { %v1271_v56 = vsub.f32 %v1266_v53, %v1270_v55 }
 0x2b9   : > { %v1272_v3 = vmul.f32 1.442695, %v1271_v56 }
 0x2bb   : > { %1841 = vpow2.f32 %v1272_v3 }
 0x2c5   : > { %v1842_v57 = vpop.eup %1841 }
 0x2c6   : > { %1274 = vadd.xlane.f32.xlu0 %v1842_v57 }
 0x353   : > { %v1275_v58 = vpop.xlane.xlu0 %1274 }
 0x354   : > { %1843 = vrcp.f32 %v1275_v58 }
 0x35e   : > { %v1844_v60 = vpop.eup %1843 }
 0x35f   : > { %v1277_v62 = vmul.f32 %v1844_v60, %v1842_v57 }
 0x361   : > { %1278 = vst [vmem:[%s220_s14] sm:$0xff] %v1277_v62 }
 0x362   : > { %1858 = shalt.err (!%p1855_p3)
}
 0x363   : > { %s1859_s6 = scalar_lea.hbm %s2307_s17, 128  ;;  %s1863_s11 = scalar_lea.hbm %s2354_s5, 256 }
 0x364   : > { %p1860_p4 = scmp.ne.s32.totalorder %s2307_s17, %s1859_s6  ;;  %p1864_p9 = scmp.lt.u32.totalorder %s2307_s17, %s2354_s5 }
 0x365   : > { %p1865_p10 = scmp.lt.u32.totalorder %s1863_s11, %s1859_s6  ;;  %p1867_p12 = scmp.lt.u32.totalorder %s1859_s6, %s2307_s17 }
 0x366   : > { %p1861_p7 = pnand %p1860_p4, %p1982_p5 }
 0x367   : > { %p1866_p11 = por %p1865_p10, %p1864_p9 }
 0x368   : > { %p1862_p8 = pneg %p1861_p7 }
 0x369   : > { %p1868_p13 = por %p1867_p12, %p1866_p11 }
 0x36b   : > { %p1869_p0 = pnand %p1868_p13, %p1862_p8 }
 0x36d   : > { %1872 = shalt.err (!%p1869_p0)
}
 0x36e   : > { %1798 = dma.vmem_to_hbm [thread:$0]  (%p1982_p5), %s2309_s9, 128, %s2307_s17, %s1280_s23  }
 0x36f PF: > { %p1804_p1 = scmp.ge.s32.totalorder %s1907_s21, 2  ;;  %s1305_s13 = sand.u32 1, %s1895_s18  }
 0x370   : > { %s1306_s14 = scalar_lea.sflag [#allocation3], %s1305_s13 }
 0x371   : > { %p1801_p2 = pnand %p1804_p1, %p1986_p6 }
 0x373   : > { %1890 = dma.done.wait (!%p1801_p2), %s1306_s14, 128  }
 0x374   : > { %1892 = vsyncadd (!%p1801_p2), %s1306_s14, 4294967168  ;;  %p15_p3 = scmp.ge.s32.totalorder %s1969_s24, 4   ;;  %s2357_s18 = smov %s1899_s19 }
 0x375   : > { %s2358_s19 = smov %s1903_s20  ;;  %s2359_s20 = smov %s1980_s27 }
 0x376   : > { %s2360_s21 = smov %s1969_s24  ;;  %17 = sbr.rel (!%p15_p3) target bundleno = 3 (0x3), region = 77 }
 0x37d   :  { %1311 = vsyncpa [#allocation3], 1 }
 0x37e   :  { %1313 = vsyncpa [#allocation3 + $0x1], 1 }

</bundles_post_ra>
